<compile_context>
chip_gen: v7x
topology: tpu7x:2x2x1
jax: 0.10.0
libtpu: 0.0.40
codegen_flags: <defaults>
</compile_context>

<pallas_src>
import jax
import jax.numpy as jnp
import numpy as np
from jax.experimental import pallas as pl
from jax.experimental.pallas import tpu as pltpu


# ----------------------------------------------------------------------------
# Single fused kernel: LSTM prompt scan + autoregressive decode + output head.
# All operands are whole-array VMEM blocks (everything is tiny at these sizes).
# ----------------------------------------------------------------------------
def _fused_lstm_kernel(x2d_ref, h0_ref, c0_ref, wcat_ref, b_ref,
                       wout_ref, bout_ref, out_ref, hn_ref, cn_ref):
    TB, I = x2d_ref.shape
    Bp, H = h0_ref.shape
    T = TB // Bp
    L = out_ref.shape[0]

    # Weights / biases resident in vregs for the whole kernel.
    # wcat = [W_ih_t; W_hh_t]; sublane-aligned ref slices (I, H multiples of 8).
    wih = wcat_ref[0:I, :]           # (I, 4H)
    whh = wcat_ref[I:I + H, :]       # (H, 4H)
    wcat = wcat_ref[...]             # (I+H, 4H) fused decode-step weight
    b = b_ref[...]                   # (1, 4H)
    wout = wout_ref[...]             # (H, O)
    bout = bout_ref[...]             # (1, O)

    def cell(gates, c):
        # One full-vreg sigmoid + one full-vreg tanh (EUP) instead of four
        # per-gate 32-lane transcendentals; the slices are cheap XLU selects
        # that sit on a different VLIW slot.
        sg = jax.nn.sigmoid(gates)
        th = jnp.tanh(gates)
        i_g = sg[:, 0 * H:1 * H]
        f_g = sg[:, 1 * H:2 * H]
        g_g = th[:, 2 * H:3 * H]
        o_g = sg[:, 3 * H:4 * H]
        c_new = f_g * c + i_g * g_g
        h_new = o_g * jnp.tanh(c_new)
        return h_new, c_new

    def head(h):
        logits = jnp.dot(h, wout, preferred_element_type=jnp.float32) + bout
        m = jnp.max(logits, axis=-1, keepdims=True)
        z = logits - m
        lse = jnp.log(jnp.sum(jnp.exp(z), axis=-1, keepdims=True))
        return z - lse

    # Input projection for the whole prompt in ONE MXU pass, outside the serial
    # dependency chain.  x2d is already flattened host-side -> straight load.
    xg_all = jnp.dot(x2d_ref[...], wih,
                     preferred_element_type=jnp.float32) + b    # (T*Bp, 4H)
    # TODO(synk): if T or H grow, spill xg_all to a VMEM scratch and switch the
    # unrolled loops to lax.fori_loop(..., unroll=k) to bound vreg pressure.

    # Serial prompt scan (fully unrolled: T is static and small).
    h = h0_ref[...]
    c = c0_ref[...]
    for t in range(T):
        gates = xg_all[t * Bp:(t + 1) * Bp, :] + jnp.dot(
            h, whh, preferred_element_type=jnp.float32)
        h, c = cell(gates, c)

    # Autoregressive decode: one fused [y | h] @ W_cat matmul per token.
    y = head(h)
    out_ref[0] = y
    for j in range(1, L):
        yh = jnp.concatenate([y, h], axis=1)                    # (Bp, I+H)
        gates = jnp.dot(yh, wcat, preferred_element_type=jnp.float32) + b
        h, c = cell(gates, c)
        y = head(h)
        out_ref[j] = y

    hn_ref[...] = h
    cn_ref[...] = c


# ----------------------------------------------------------------------------
# Module-level forward, mirroring BasicLSTM.forward
# ----------------------------------------------------------------------------
def basic_lstm_forward(params, x, hidden, output_length):
    """x: (T, B, input_size); hidden = (h0, c0), each (1, B, hidden_size).
    Returns (output (output_length, B, output_size), (h_n, c_n))."""
    T, B, I = x.shape
    H = hidden[0].shape[-1]
    O = params["w_out_t"].shape[-1]
    if O != I:
        raise ValueError(
            "BasicLSTM feeds its own log-softmax output back into the LSTM, "
            f"which requires output_size == input_size (got O={O}, I={I}).")

    # Pad batch to a multiple of 8 rows (f32 sublane tile). Rows are
    # independent in every op, so padded rows are just sliced off at the end.
    Bp = ((B + 7) // 8) * 8
    pad = Bp - B
    h0, c0 = hidden[0][0], hidden[1][0]
    if pad:
        x = jnp.pad(x, ((0, 0), (0, pad), (0, 0)))
        h0 = jnp.pad(h0, ((0, pad), (0, 0)))
        c0 = jnp.pad(c0, ((0, pad), (0, 0)))
    # Free XLA-level flatten of contiguous time-major data (avoids the
    # tile-crossing reshape that previously happened inside the kernel).
    x2d = x.reshape(T * Bp, I)

    # Advisory cost hint for XLA's scheduler around this latency-bound call.
    flops = (2 * (T + output_length) * Bp * (I + H) * 4 * H
             + 2 * output_length * Bp * H * O)
    transcendentals = ((T + output_length) * Bp * 5 * H
                       + output_length * Bp * O)
    bytes_accessed = 4 * (x2d.size + 2 * Bp * H
                          + params["w_cat"].size + params["b_lstm"].size
                          + params["w_out_t"].size + params["b_out"].size
                          + output_length * Bp * O + 2 * Bp * H)

    vmem = pl.BlockSpec(memory_space=pltpu.MemorySpace.VMEM)
    out, h_n, c_n = pl.pallas_call(
        _fused_lstm_kernel,
        out_shape=(jax.ShapeDtypeStruct((output_length, Bp, O), jnp.float32),
                   jax.ShapeDtypeStruct((Bp, H), jnp.float32),
                   jax.ShapeDtypeStruct((Bp, H), jnp.float32)),
        in_specs=[vmem] * 7,
        out_specs=(vmem, vmem, vmem),
        cost_estimate=pl.CostEstimate(flops=flops,
                                      transcendentals=transcendentals,
                                      bytes_accessed=bytes_accessed),
    )(x2d, h0, c0,
      params["w_cat"], params["b_lstm"], params["w_out_t"], params["b_out"])

    out = out[:, :B, :]
    return out, (h_n[:B][None], c_n[:B][None])


# ----------------------------------------------------------------------------
# Pure-JAX reference (for correctness check)
# ----------------------------------------------------------------------------
def ref_forward(params, x, hidden, output_length):
    H = hidden[0].shape[-1]

    def cell(x_t, h, c):
        gates = x_t @ params["w_ih_t"] + h @ params["w_hh_t"] + params["b_lstm"]
        i = jax.nn.sigmoid(gates[:, :H])
        f = jax.nn.sigmoid(gates[:, H:2 * H])
        g = jnp.tanh(gates[:, 2 * H:3 * H])
        o = jax.nn.sigmoid(gates[:, 3 * H:])
        c = f * c + i * g
        h = o * jnp.tanh(c)
        return h, c

    def run_seq(seq, h, c):
        for t in range(seq.shape[0]):
            h, c = cell(seq[t], h, c)
        return h, c

    def head_ref(h):
        logits = h @ params["w_out_t"] + params["b_out"]
        return jax.nn.log_softmax(logits, axis=-1)

    h, c = hidden[0][0], hidden[1][0]
    h, c = run_seq(x, h, c)
    outs = [head_ref(h)[None]]
    for _ in range(1, output_length):
        h, c = run_seq(outs[-1], h, c)
        outs.append(head_ref(h)[None])
    return jnp.concatenate(outs, 0), (h[None], c[None])


# ----------------------------------------------------------------------------
# Deterministic parameter init (shapes follow nn.LSTM / nn.Linear in __init__)
# ----------------------------------------------------------------------------
def init_params(key, input_size, hidden_size, output_size):
    k = 1.0 / np.sqrt(hidden_size)
    keys = jax.random.split(key, 6)
    w_ih = jax.random.uniform(keys[0], (4 * hidden_size, input_size), jnp.float32, -k, k)
    w_hh = jax.random.uniform(keys[1], (4 * hidden_size, hidden_size), jnp.float32, -k, k)
    b_ih = jax.random.uniform(keys[2], (4 * hidden_size,), jnp.float32, -k, k)
    b_hh = jax.random.uniform(keys[3], (4 * hidden_size,), jnp.float32, -k, k)
    w_out = jax.random.uniform(keys[4], (output_size, hidden_size), jnp.float32, -k, k)
    b_out = jax.random.uniform(keys[5], (output_size,), jnp.float32, -k, k)
    w_ih_t = w_ih.T                      # (I, 4H)
    w_hh_t = w_hh.T                      # (H, 4H)
    return {
        "w_ih_t": w_ih_t,
        "w_hh_t": w_hh_t,
        "w_cat": jnp.concatenate([w_ih_t, w_hh_t], axis=0),   # (I+H, 4H), fused decode weight
        "b_lstm": (b_ih + b_hh)[None, :],                      # (1, 4H)
        "w_out_t": w_out.T,                                    # (H, O)
        "b_out": b_out[None, :],                               # (1, O)
    }


if __name__ == "__main__":
    INPUT_SIZE = 16
    HIDDEN_SIZE = 32
    OUTPUT_SIZE = 16            # must equal INPUT_SIZE for the autoregressive loop
    OUTPUT_LENGTH = 3
    SEQ_LEN = 8
    BATCH = 4

    root = jax.random.PRNGKey(0)
    k_param, k_x, k_h, k_c = jax.random.split(root, 4)

    params = init_params(k_param, INPUT_SIZE, HIDDEN_SIZE, OUTPUT_SIZE)
    x = jax.random.normal(k_x, (SEQ_LEN, BATCH, INPUT_SIZE), jnp.float32)
    h0 = jax.random.normal(k_h, (1, BATCH, HIDDEN_SIZE), jnp.float32)
    c0 = jax.random.normal(k_c, (1, BATCH, HIDDEN_SIZE), jnp.float32)

    fwd = jax.jit(basic_lstm_forward, static_argnums=(3,))
    out, (h_n, c_n) = fwd(params, x, (h0, c0), OUTPUT_LENGTH)
    jax.block_until_ready((out, h_n, c_n))

    ref_out, (ref_h, ref_c) = ref_forward(params, x, (h0, c0), OUTPUT_LENGTH)
    np.testing.assert_allclose(np.asarray(out), np.asarray(ref_out), atol=1e-4, rtol=1e-4)
    np.testing.assert_allclose(np.asarray(h_n), np.asarray(ref_h), atol=1e-4, rtol=1e-4)
    np.testing.assert_allclose(np.asarray(c_n), np.asarray(ref_c), atol=1e-4, rtol=1e-4)

    assert out.shape == (OUTPUT_LENGTH, BATCH, OUTPUT_SIZE)
    assert h_n.shape == (1, BATCH, HIDDEN_SIZE) and c_n.shape == (1, BATCH, HIDDEN_SIZE)
    print("KERNEL_OK")
</pallas_src>

<mosaic_0001>
module attributes {stable_mosaic.version = 11 : i64} {
  func.func @_fused_lstm_kernel(%arg0: memref<64x16xf32, #tpu.memory_space<vmem>>, %arg1: memref<8x32xf32, #tpu.memory_space<vmem>>, %arg2: memref<8x32xf32, #tpu.memory_space<vmem>>, %arg3: memref<48x128xf32, #tpu.memory_space<vmem>>, %arg4: memref<1x128xf32, #tpu.memory_space<vmem>>, %arg5: memref<32x16xf32, #tpu.memory_space<vmem>>, %arg6: memref<1x16xf32, #tpu.memory_space<vmem>>, %arg7: memref<3x8x16xf32, #tpu.memory_space<vmem>>, %arg8: memref<8x32xf32, #tpu.memory_space<vmem>>, %arg9: memref<8x32xf32, #tpu.memory_space<vmem>>) attributes {dimension_semantics = [], scalar_prefetch = 0 : i64, scratch_operands = 0 : i64, tpu.core_type = #tpu.core_type<tc>} {
    %c0 = arith.constant 0 : index
    %c0_0 = arith.constant 0 : index
    %0 = vector.load %arg3[%c0, %c0_0] : memref<48x128xf32, #tpu.memory_space<vmem>>, vector<16x128xf32>
    %c16 = arith.constant 16 : index
    %c0_1 = arith.constant 0 : index
    %1 = vector.load %arg3[%c16, %c0_1] : memref<48x128xf32, #tpu.memory_space<vmem>>, vector<32x128xf32>
    %c0_2 = arith.constant 0 : index
    %c0_3 = arith.constant 0 : index
    %2 = vector.load %arg3[%c0_2, %c0_3] : memref<48x128xf32, #tpu.memory_space<vmem>>, vector<48x128xf32>
    %c0_4 = arith.constant 0 : index
    %c0_5 = arith.constant 0 : index
    %3 = vector.load %arg4[%c0_4, %c0_5] : memref<1x128xf32, #tpu.memory_space<vmem>>, vector<1x128xf32>
    %c0_6 = arith.constant 0 : index
    %c0_7 = arith.constant 0 : index
    %4 = vector.load %arg5[%c0_6, %c0_7] : memref<32x16xf32, #tpu.memory_space<vmem>>, vector<32x16xf32>
    %c0_8 = arith.constant 0 : index
    %c0_9 = arith.constant 0 : index
    %5 = vector.load %arg6[%c0_8, %c0_9] : memref<1x16xf32, #tpu.memory_space<vmem>>, vector<1x16xf32>
    %c0_10 = arith.constant 0 : index
    %c0_11 = arith.constant 0 : index
    %6 = vector.load %arg0[%c0_10, %c0_11] : memref<64x16xf32, #tpu.memory_space<vmem>>, vector<64x16xf32>
    %cst = arith.constant dense<0.000000e+00> : vector<64x128xf32>
    %7 = tpu.matmul %6, %0, %cst {dimension_numbers = #tpu.dot_dimension_numbers<[1], [0], [0], [1], [0, 0, 1, 1], [], []>} : vector<64x16xf32>, vector<16x128xf32>, vector<64x128xf32> -> vector<64x128xf32>
    %8 = vector.broadcast %3 : vector<1x128xf32> to vector<64x128xf32>
    %9 = arith.addf %7, %8 : vector<64x128xf32>
    %c0_12 = arith.constant 0 : index
    %c0_13 = arith.constant 0 : index
    %10 = vector.load %arg1[%c0_12, %c0_13] : memref<8x32xf32, #tpu.memory_space<vmem>>, vector<8x32xf32>
    %c0_14 = arith.constant 0 : index
    %c0_15 = arith.constant 0 : index
    %11 = vector.load %arg2[%c0_14, %c0_15] : memref<8x32xf32, #tpu.memory_space<vmem>>, vector<8x32xf32>
    %12 = vector.extract_strided_slice %9 {offsets = [0, 0], sizes = [8, 128], strides = [1, 1]} : vector<64x128xf32> to vector<8x128xf32>
    %cst_16 = arith.constant dense<0.000000e+00> : vector<8x128xf32>
    %13 = tpu.matmul %10, %1, %cst_16 {dimension_numbers = #tpu.dot_dimension_numbers<[1], [0], [0], [1], [0, 0, 1, 1], [], []>} : vector<8x32xf32>, vector<32x128xf32>, vector<8x128xf32> -> vector<8x128xf32>
    %14 = arith.addf %12, %13 : vector<8x128xf32>
    %15 = arith.negf %14 : vector<8x128xf32>
    %16 = math.exp %15 : vector<8x128xf32>
    %cst_17 = arith.constant 1.000000e+00 : f32
    %17 = vector.broadcast %cst_17 : f32 to vector<8x128xf32>
    %18 = arith.addf %17, %16 : vector<8x128xf32>
    %19 = arith.divf %17, %18 : vector<8x128xf32>
    %20 = math.tanh %14 : vector<8x128xf32>
    %21 = vector.extract_strided_slice %19 {offsets = [0, 0], sizes = [8, 32], strides = [1, 1]} : vector<8x128xf32> to vector<8x32xf32>
    %22 = vector.extract_strided_slice %19 {offsets = [0, 32], sizes = [8, 32], strides = [1, 1]} : vector<8x128xf32> to vector<8x32xf32>
    %23 = vector.extract_strided_slice %20 {offsets = [0, 64], sizes = [8, 32], strides = [1, 1]} : vector<8x128xf32> to vector<8x32xf32>
    %24 = vector.extract_strided_slice %19 {offsets = [0, 96], sizes = [8, 32], strides = [1, 1]} : vector<8x128xf32> to vector<8x32xf32>
    %25 = arith.mulf %22, %11 : vector<8x32xf32>
    %26 = arith.mulf %21, %23 : vector<8x32xf32>
    %27 = arith.addf %25, %26 : vector<8x32xf32>
    %28 = math.tanh %27 : vector<8x32xf32>
    %29 = arith.mulf %24, %28 : vector<8x32xf32>
    %30 = vector.extract_strided_slice %9 {offsets = [8, 0], sizes = [8, 128], strides = [1, 1]} : vector<64x128xf32> to vector<8x128xf32>
    %cst_18 = arith.constant dense<0.000000e+00> : vector<8x128xf32>
    %31 = tpu.matmul %29, %1, %cst_18 {dimension_numbers = #tpu.dot_dimension_numbers<[1], [0], [0], [1], [0, 0, 1, 1], [], []>} : vector<8x32xf32>, vector<32x128xf32>, vector<8x128xf32> -> vector<8x128xf32>
    %32 = arith.addf %30, %31 : vector<8x128xf32>
    %33 = arith.negf %32 : vector<8x128xf32>
    %34 = math.exp %33 : vector<8x128xf32>
    %cst_19 = arith.constant 1.000000e+00 : f32
    %35 = vector.broadcast %cst_19 : f32 to vector<8x128xf32>
    %36 = arith.addf %35, %34 : vector<8x128xf32>
    %37 = arith.divf %35, %36 : vector<8x128xf32>
    %38 = math.tanh %32 : vector<8x128xf32>
    %39 = vector.extract_strided_slice %37 {offsets = [0, 0], sizes = [8, 32], strides = [1, 1]} : vector<8x128xf32> to vector<8x32xf32>
    %40 = vector.extract_strided_slice %37 {offsets = [0, 32], sizes = [8, 32], strides = [1, 1]} : vector<8x128xf32> to vector<8x32xf32>
    %41 = vector.extract_strided_slice %38 {offsets = [0, 64], sizes = [8, 32], strides = [1, 1]} : vector<8x128xf32> to vector<8x32xf32>
    %42 = vector.extract_strided_slice %37 {offsets = [0, 96], sizes = [8, 32], strides = [1, 1]} : vector<8x128xf32> to vector<8x32xf32>
    %43 = arith.mulf %40, %27 : vector<8x32xf32>
    %44 = arith.mulf %39, %41 : vector<8x32xf32>
    %45 = arith.addf %43, %44 : vector<8x32xf32>
    %46 = math.tanh %45 : vector<8x32xf32>
    %47 = arith.mulf %42, %46 : vector<8x32xf32>
    %48 = vector.extract_strided_slice %9 {offsets = [16, 0], sizes = [8, 128], strides = [1, 1]} : vector<64x128xf32> to vector<8x128xf32>
    %cst_20 = arith.constant dense<0.000000e+00> : vector<8x128xf32>
    %49 = tpu.matmul %47, %1, %cst_20 {dimension_numbers = #tpu.dot_dimension_numbers<[1], [0], [0], [1], [0, 0, 1, 1], [], []>} : vector<8x32xf32>, vector<32x128xf32>, vector<8x128xf32> -> vector<8x128xf32>
    %50 = arith.addf %48, %49 : vector<8x128xf32>
    %51 = arith.negf %50 : vector<8x128xf32>
    %52 = math.exp %51 : vector<8x128xf32>
    %cst_21 = arith.constant 1.000000e+00 : f32
    %53 = vector.broadcast %cst_21 : f32 to vector<8x128xf32>
    %54 = arith.addf %53, %52 : vector<8x128xf32>
    %55 = arith.divf %53, %54 : vector<8x128xf32>
    %56 = math.tanh %50 : vector<8x128xf32>
    %57 = vector.extract_strided_slice %55 {offsets = [0, 0], sizes = [8, 32], strides = [1, 1]} : vector<8x128xf32> to vector<8x32xf32>
    %58 = vector.extract_strided_slice %55 {offsets = [0, 32], sizes = [8, 32], strides = [1, 1]} : vector<8x128xf32> to vector<8x32xf32>
    %59 = vector.extract_strided_slice %56 {offsets = [0, 64], sizes = [8, 32], strides = [1, 1]} : vector<8x128xf32> to vector<8x32xf32>
    %60 = vector.extract_strided_slice %55 {offsets = [0, 96], sizes = [8, 32], strides = [1, 1]} : vector<8x128xf32> to vector<8x32xf32>
    %61 = arith.mulf %58, %45 : vector<8x32xf32>
    %62 = arith.mulf %57, %59 : vector<8x32xf32>
    %63 = arith.addf %61, %62 : vector<8x32xf32>
    %64 = math.tanh %63 : vector<8x32xf32>
    %65 = arith.mulf %60, %64 : vector<8x32xf32>
    %66 = vector.extract_strided_slice %9 {offsets = [24, 0], sizes = [8, 128], strides = [1, 1]} : vector<64x128xf32> to vector<8x128xf32>
    %cst_22 = arith.constant dense<0.000000e+00> : vector<8x128xf32>
    %67 = tpu.matmul %65, %1, %cst_22 {dimension_numbers = #tpu.dot_dimension_numbers<[1], [0], [0], [1], [0, 0, 1, 1], [], []>} : vector<8x32xf32>, vector<32x128xf32>, vector<8x128xf32> -> vector<8x128xf32>
    %68 = arith.addf %66, %67 : vector<8x128xf32>
    %69 = arith.negf %68 : vector<8x128xf32>
    %70 = math.exp %69 : vector<8x128xf32>
    %cst_23 = arith.constant 1.000000e+00 : f32
    %71 = vector.broadcast %cst_23 : f32 to vector<8x128xf32>
    %72 = arith.addf %71, %70 : vector<8x128xf32>
    %73 = arith.divf %71, %72 : vector<8x128xf32>
    %74 = math.tanh %68 : vector<8x128xf32>
    %75 = vector.extract_strided_slice %73 {offsets = [0, 0], sizes = [8, 32], strides = [1, 1]} : vector<8x128xf32> to vector<8x32xf32>
    %76 = vector.extract_strided_slice %73 {offsets = [0, 32], sizes = [8, 32], strides = [1, 1]} : vector<8x128xf32> to vector<8x32xf32>
    %77 = vector.extract_strided_slice %74 {offsets = [0, 64], sizes = [8, 32], strides = [1, 1]} : vector<8x128xf32> to vector<8x32xf32>
    %78 = vector.extract_strided_slice %73 {offsets = [0, 96], sizes = [8, 32], strides = [1, 1]} : vector<8x128xf32> to vector<8x32xf32>
    %79 = arith.mulf %76, %63 : vector<8x32xf32>
    %80 = arith.mulf %75, %77 : vector<8x32xf32>
    %81 = arith.addf %79, %80 : vector<8x32xf32>
    %82 = math.tanh %81 : vector<8x32xf32>
    %83 = arith.mulf %78, %82 : vector<8x32xf32>
    %84 = vector.extract_strided_slice %9 {offsets = [32, 0], sizes = [8, 128], strides = [1, 1]} : vector<64x128xf32> to vector<8x128xf32>
    %cst_24 = arith.constant dense<0.000000e+00> : vector<8x128xf32>
    %85 = tpu.matmul %83, %1, %cst_24 {dimension_numbers = #tpu.dot_dimension_numbers<[1], [0], [0], [1], [0, 0, 1, 1], [], []>} : vector<8x32xf32>, vector<32x128xf32>, vector<8x128xf32> -> vector<8x128xf32>
    %86 = arith.addf %84, %85 : vector<8x128xf32>
    %87 = arith.negf %86 : vector<8x128xf32>
    %88 = math.exp %87 : vector<8x128xf32>
    %cst_25 = arith.constant 1.000000e+00 : f32
    %89 = vector.broadcast %cst_25 : f32 to vector<8x128xf32>
    %90 = arith.addf %89, %88 : vector<8x128xf32>
    %91 = arith.divf %89, %90 : vector<8x128xf32>
    %92 = math.tanh %86 : vector<8x128xf32>
    %93 = vector.extract_strided_slice %91 {offsets = [0, 0], sizes = [8, 32], strides = [1, 1]} : vector<8x128xf32> to vector<8x32xf32>
    %94 = vector.extract_strided_slice %91 {offsets = [0, 32], sizes = [8, 32], strides = [1, 1]} : vector<8x128xf32> to vector<8x32xf32>
    %95 = vector.extract_strided_slice %92 {offsets = [0, 64], sizes = [8, 32], strides = [1, 1]} : vector<8x128xf32> to vector<8x32xf32>
    %96 = vector.extract_strided_slice %91 {offsets = [0, 96], sizes = [8, 32], strides = [1, 1]} : vector<8x128xf32> to vector<8x32xf32>
    %97 = arith.mulf %94, %81 : vector<8x32xf32>
    %98 = arith.mulf %93, %95 : vector<8x32xf32>
    %99 = arith.addf %97, %98 : vector<8x32xf32>
    %100 = math.tanh %99 : vector<8x32xf32>
    %101 = arith.mulf %96, %100 : vector<8x32xf32>
    %102 = vector.extract_strided_slice %9 {offsets = [40, 0], sizes = [8, 128], strides = [1, 1]} : vector<64x128xf32> to vector<8x128xf32>
    %cst_26 = arith.constant dense<0.000000e+00> : vector<8x128xf32>
    %103 = tpu.matmul %101, %1, %cst_26 {dimension_numbers = #tpu.dot_dimension_numbers<[1], [0], [0], [1], [0, 0, 1, 1], [], []>} : vector<8x32xf32>, vector<32x128xf32>, vector<8x128xf32> -> vector<8x128xf32>
    %104 = arith.addf %102, %103 : vector<8x128xf32>
    %105 = arith.negf %104 : vector<8x128xf32>
    %106 = math.exp %105 : vector<8x128xf32>
    %cst_27 = arith.constant 1.000000e+00 : f32
    %107 = vector.broadcast %cst_27 : f32 to vector<8x128xf32>
    %108 = arith.addf %107, %106 : vector<8x128xf32>
    %109 = arith.divf %107, %108 : vector<8x128xf32>
    %110 = math.tanh %104 : vector<8x128xf32>
    %111 = vector.extract_strided_slice %109 {offsets = [0, 0], sizes = [8, 32], strides = [1, 1]} : vector<8x128xf32> to vector<8x32xf32>
    %112 = vector.extract_strided_slice %109 {offsets = [0, 32], sizes = [8, 32], strides = [1, 1]} : vector<8x128xf32> to vector<8x32xf32>
    %113 = vector.extract_strided_slice %110 {offsets = [0, 64], sizes = [8, 32], strides = [1, 1]} : vector<8x128xf32> to vector<8x32xf32>
    %114 = vector.extract_strided_slice %109 {offsets = [0, 96], sizes = [8, 32], strides = [1, 1]} : vector<8x128xf32> to vector<8x32xf32>
    %115 = arith.mulf %112, %99 : vector<8x32xf32>
    %116 = arith.mulf %111, %113 : vector<8x32xf32>
    %117 = arith.addf %115, %116 : vector<8x32xf32>
    %118 = math.tanh %117 : vector<8x32xf32>
    %119 = arith.mulf %114, %118 : vector<8x32xf32>
    %120 = vector.extract_strided_slice %9 {offsets = [48, 0], sizes = [8, 128], strides = [1, 1]} : vector<64x128xf32> to vector<8x128xf32>
    %cst_28 = arith.constant dense<0.000000e+00> : vector<8x128xf32>
    %121 = tpu.matmul %119, %1, %cst_28 {dimension_numbers = #tpu.dot_dimension_numbers<[1], [0], [0], [1], [0, 0, 1, 1], [], []>} : vector<8x32xf32>, vector<32x128xf32>, vector<8x128xf32> -> vector<8x128xf32>
    %122 = arith.addf %120, %121 : vector<8x128xf32>
    %123 = arith.negf %122 : vector<8x128xf32>
    %124 = math.exp %123 : vector<8x128xf32>
    %cst_29 = arith.constant 1.000000e+00 : f32
    %125 = vector.broadcast %cst_29 : f32 to vector<8x128xf32>
    %126 = arith.addf %125, %124 : vector<8x128xf32>
    %127 = arith.divf %125, %126 : vector<8x128xf32>
    %128 = math.tanh %122 : vector<8x128xf32>
    %129 = vector.extract_strided_slice %127 {offsets = [0, 0], sizes = [8, 32], strides = [1, 1]} : vector<8x128xf32> to vector<8x32xf32>
    %130 = vector.extract_strided_slice %127 {offsets = [0, 32], sizes = [8, 32], strides = [1, 1]} : vector<8x128xf32> to vector<8x32xf32>
    %131 = vector.extract_strided_slice %128 {offsets = [0, 64], sizes = [8, 32], strides = [1, 1]} : vector<8x128xf32> to vector<8x32xf32>
    %132 = vector.extract_strided_slice %127 {offsets = [0, 96], sizes = [8, 32], strides = [1, 1]} : vector<8x128xf32> to vector<8x32xf32>
    %133 = arith.mulf %130, %117 : vector<8x32xf32>
    %134 = arith.mulf %129, %131 : vector<8x32xf32>
    %135 = arith.addf %133, %134 : vector<8x32xf32>
    %136 = math.tanh %135 : vector<8x32xf32>
    %137 = arith.mulf %132, %136 : vector<8x32xf32>
    %138 = vector.extract_strided_slice %9 {offsets = [56, 0], sizes = [8, 128], strides = [1, 1]} : vector<64x128xf32> to vector<8x128xf32>
    %cst_30 = arith.constant dense<0.000000e+00> : vector<8x128xf32>
    %139 = tpu.matmul %137, %1, %cst_30 {dimension_numbers = #tpu.dot_dimension_numbers<[1], [0], [0], [1], [0, 0, 1, 1], [], []>} : vector<8x32xf32>, vector<32x128xf32>, vector<8x128xf32> -> vector<8x128xf32>
    %140 = arith.addf %138, %139 : vector<8x128xf32>
    %141 = arith.negf %140 : vector<8x128xf32>
    %142 = math.exp %141 : vector<8x128xf32>
    %cst_31 = arith.constant 1.000000e+00 : f32
    %143 = vector.broadcast %cst_31 : f32 to vector<8x128xf32>
    %144 = arith.addf %143, %142 : vector<8x128xf32>
    %145 = arith.divf %143, %144 : vector<8x128xf32>
    %146 = math.tanh %140 : vector<8x128xf32>
    %147 = vector.extract_strided_slice %145 {offsets = [0, 0], sizes = [8, 32], strides = [1, 1]} : vector<8x128xf32> to vector<8x32xf32>
    %148 = vector.extract_strided_slice %145 {offsets = [0, 32], sizes = [8, 32], strides = [1, 1]} : vector<8x128xf32> to vector<8x32xf32>
    %149 = vector.extract_strided_slice %146 {offsets = [0, 64], sizes = [8, 32], strides = [1, 1]} : vector<8x128xf32> to vector<8x32xf32>
    %150 = vector.extract_strided_slice %145 {offsets = [0, 96], sizes = [8, 32], strides = [1, 1]} : vector<8x128xf32> to vector<8x32xf32>
    %151 = arith.mulf %148, %135 : vector<8x32xf32>
    %152 = arith.mulf %147, %149 : vector<8x32xf32>
    %153 = arith.addf %151, %152 : vector<8x32xf32>
    %154 = math.tanh %153 : vector<8x32xf32>
    %155 = arith.mulf %150, %154 : vector<8x32xf32>
    %cst_32 = arith.constant dense<0.000000e+00> : vector<8x16xf32>
    %156 = tpu.matmul %155, %4, %cst_32 {dimension_numbers = #tpu.dot_dimension_numbers<[1], [0], [0], [1], [0, 0, 1, 1], [], []>} : vector<8x32xf32>, vector<32x16xf32>, vector<8x16xf32> -> vector<8x16xf32>
    %157 = vector.broadcast %5 : vector<1x16xf32> to vector<8x16xf32>
    %158 = arith.addf %156, %157 : vector<8x16xf32>
    %cst_33 = arith.constant dense<0xFF800000> : vector<8xf32>
    %159 = vector.multi_reduction <maximumf>, %158, %cst_33 [1] : vector<8x16xf32> to vector<8xf32>
    %160 = vector.shape_cast %159 : vector<8xf32> to vector<8x1xf32>
    %161 = vector.broadcast %160 : vector<8x1xf32> to vector<8x16xf32>
    %162 = arith.subf %158, %161 : vector<8x16xf32>
    %163 = math.exp %162 : vector<8x16xf32>
    %cst_34 = arith.constant dense<0.000000e+00> : vector<8xf32>
    %164 = vector.multi_reduction <add>, %163, %cst_34 [1] : vector<8x16xf32> to vector<8xf32>
    %165 = vector.shape_cast %164 : vector<8xf32> to vector<8x1xf32>
    %166 = math.log %165 : vector<8x1xf32>
    %167 = vector.broadcast %166 : vector<8x1xf32> to vector<8x16xf32>
    %168 = arith.subf %162, %167 : vector<8x16xf32>
    %c0_35 = arith.constant 0 : index
    %c0_36 = arith.constant 0 : index
    %c0_37 = arith.constant 0 : index
    %169 = vector.load %arg7[%c0_35, %c0_36, %c0_37] : memref<3x8x16xf32, #tpu.memory_space<vmem>>, vector<1x8x16xf32>
    %170 = vector.shape_cast %169 : vector<1x8x16xf32> to vector<8x16xf32>
    %171 = vector.shape_cast %168 : vector<8x16xf32> to vector<1x8x16xf32>
    tpu.vector_store %arg7[%c0_35, %c0_36, %c0_37], %171 {strides = array<i32>} : memref<3x8x16xf32, #tpu.memory_space<vmem>>, vector<1x8x16xf32>,
    %172 = tpu.concatenate %168, %155 in 1 : vector<8x16xf32>, vector<8x32xf32> -> vector<8x48xf32>
    %cst_38 = arith.constant dense<0.000000e+00> : vector<8x128xf32>
    %173 = tpu.matmul %172, %2, %cst_38 {dimension_numbers = #tpu.dot_dimension_numbers<[1], [0], [0], [1], [0, 0, 1, 1], [], []>} : vector<8x48xf32>, vector<48x128xf32>, vector<8x128xf32> -> vector<8x128xf32>
    %174 = vector.broadcast %3 : vector<1x128xf32> to vector<8x128xf32>
    %175 = arith.addf %173, %174 : vector<8x128xf32>
    %176 = arith.negf %175 : vector<8x128xf32>
    %177 = math.exp %176 : vector<8x128xf32>
    %cst_39 = arith.constant 1.000000e+00 : f32
    %178 = vector.broadcast %cst_39 : f32 to vector<8x128xf32>
    %179 = arith.addf %178, %177 : vector<8x128xf32>
    %180 = arith.divf %178, %179 : vector<8x128xf32>
    %181 = math.tanh %175 : vector<8x128xf32>
    %182 = vector.extract_strided_slice %180 {offsets = [0, 0], sizes = [8, 32], strides = [1, 1]} : vector<8x128xf32> to vector<8x32xf32>
    %183 = vector.extract_strided_slice %180 {offsets = [0, 32], sizes = [8, 32], strides = [1, 1]} : vector<8x128xf32> to vector<8x32xf32>
    %184 = vector.extract_strided_slice %181 {offsets = [0, 64], sizes = [8, 32], strides = [1, 1]} : vector<8x128xf32> to vector<8x32xf32>
    %185 = vector.extract_strided_slice %180 {offsets = [0, 96], sizes = [8, 32], strides = [1, 1]} : vector<8x128xf32> to vector<8x32xf32>
    %186 = arith.mulf %183, %153 : vector<8x32xf32>
    %187 = arith.mulf %182, %184 : vector<8x32xf32>
    %188 = arith.addf %186, %187 : vector<8x32xf32>
    %189 = math.tanh %188 : vector<8x32xf32>
    %190 = arith.mulf %185, %189 : vector<8x32xf32>
    %cst_40 = arith.constant dense<0.000000e+00> : vector<8x16xf32>
    %191 = tpu.matmul %190, %4, %cst_40 {dimension_numbers = #tpu.dot_dimension_numbers<[1], [0], [0], [1], [0, 0, 1, 1], [], []>} : vector<8x32xf32>, vector<32x16xf32>, vector<8x16xf32> -> vector<8x16xf32>
    %192 = vector.broadcast %5 : vector<1x16xf32> to vector<8x16xf32>
    %193 = arith.addf %191, %192 : vector<8x16xf32>
    %cst_41 = arith.constant dense<0xFF800000> : vector<8xf32>
    %194 = vector.multi_reduction <maximumf>, %193, %cst_41 [1] : vector<8x16xf32> to vector<8xf32>
    %195 = vector.shape_cast %194 : vector<8xf32> to vector<8x1xf32>
    %196 = vector.broadcast %195 : vector<8x1xf32> to vector<8x16xf32>
    %197 = arith.subf %193, %196 : vector<8x16xf32>
    %198 = math.exp %197 : vector<8x16xf32>
    %cst_42 = arith.constant dense<0.000000e+00> : vector<8xf32>
    %199 = vector.multi_reduction <add>, %198, %cst_42 [1] : vector<8x16xf32> to vector<8xf32>
    %200 = vector.shape_cast %199 : vector<8xf32> to vector<8x1xf32>
    %201 = math.log %200 : vector<8x1xf32>
    %202 = vector.broadcast %201 : vector<8x1xf32> to vector<8x16xf32>
    %203 = arith.subf %197, %202 : vector<8x16xf32>
    %c1 = arith.constant 1 : index
    %c0_43 = arith.constant 0 : index
    %c0_44 = arith.constant 0 : index
    %204 = vector.load %arg7[%c1, %c0_43, %c0_44] : memref<3x8x16xf32, #tpu.memory_space<vmem>>, vector<1x8x16xf32>
    %205 = vector.shape_cast %204 : vector<1x8x16xf32> to vector<8x16xf32>
    %206 = vector.shape_cast %203 : vector<8x16xf32> to vector<1x8x16xf32>
    tpu.vector_store %arg7[%c1, %c0_43, %c0_44], %206 {strides = array<i32>} : memref<3x8x16xf32, #tpu.memory_space<vmem>>, vector<1x8x16xf32>,
    %207 = tpu.concatenate %203, %190 in 1 : vector<8x16xf32>, vector<8x32xf32> -> vector<8x48xf32>
    %cst_45 = arith.constant dense<0.000000e+00> : vector<8x128xf32>
    %208 = tpu.matmul %207, %2, %cst_45 {dimension_numbers = #tpu.dot_dimension_numbers<[1], [0], [0], [1], [0, 0, 1, 1], [], []>} : vector<8x48xf32>, vector<48x128xf32>, vector<8x128xf32> -> vector<8x128xf32>
    %209 = vector.broadcast %3 : vector<1x128xf32> to vector<8x128xf32>
    %210 = arith.addf %208, %209 : vector<8x128xf32>
    %211 = arith.negf %210 : vector<8x128xf32>
    %212 = math.exp %211 : vector<8x128xf32>
    %cst_46 = arith.constant 1.000000e+00 : f32
    %213 = vector.broadcast %cst_46 : f32 to vector<8x128xf32>
    %214 = arith.addf %213, %212 : vector<8x128xf32>
    %215 = arith.divf %213, %214 : vector<8x128xf32>
    %216 = math.tanh %210 : vector<8x128xf32>
    %217 = vector.extract_strided_slice %215 {offsets = [0, 0], sizes = [8, 32], strides = [1, 1]} : vector<8x128xf32> to vector<8x32xf32>
    %218 = vector.extract_strided_slice %215 {offsets = [0, 32], sizes = [8, 32], strides = [1, 1]} : vector<8x128xf32> to vector<8x32xf32>
    %219 = vector.extract_strided_slice %216 {offsets = [0, 64], sizes = [8, 32], strides = [1, 1]} : vector<8x128xf32> to vector<8x32xf32>
    %220 = vector.extract_strided_slice %215 {offsets = [0, 96], sizes = [8, 32], strides = [1, 1]} : vector<8x128xf32> to vector<8x32xf32>
    %221 = arith.mulf %218, %188 : vector<8x32xf32>
    %222 = arith.mulf %217, %219 : vector<8x32xf32>
    %223 = arith.addf %221, %222 : vector<8x32xf32>
    %224 = math.tanh %223 : vector<8x32xf32>
    %225 = arith.mulf %220, %224 : vector<8x32xf32>
    %cst_47 = arith.constant dense<0.000000e+00> : vector<8x16xf32>
    %226 = tpu.matmul %225, %4, %cst_47 {dimension_numbers = #tpu.dot_dimension_numbers<[1], [0], [0], [1], [0, 0, 1, 1], [], []>} : vector<8x32xf32>, vector<32x16xf32>, vector<8x16xf32> -> vector<8x16xf32>
    %227 = vector.broadcast %5 : vector<1x16xf32> to vector<8x16xf32>
    %228 = arith.addf %226, %227 : vector<8x16xf32>
    %cst_48 = arith.constant dense<0xFF800000> : vector<8xf32>
    %229 = vector.multi_reduction <maximumf>, %228, %cst_48 [1] : vector<8x16xf32> to vector<8xf32>
    %230 = vector.shape_cast %229 : vector<8xf32> to vector<8x1xf32>
    %231 = vector.broadcast %230 : vector<8x1xf32> to vector<8x16xf32>
    %232 = arith.subf %228, %231 : vector<8x16xf32>
    %233 = math.exp %232 : vector<8x16xf32>
    %cst_49 = arith.constant dense<0.000000e+00> : vector<8xf32>
    %234 = vector.multi_reduction <add>, %233, %cst_49 [1] : vector<8x16xf32> to vector<8xf32>
    %235 = vector.shape_cast %234 : vector<8xf32> to vector<8x1xf32>
    %236 = math.log %235 : vector<8x1xf32>
    %237 = vector.broadcast %236 : vector<8x1xf32> to vector<8x16xf32>
    %238 = arith.subf %232, %237 : vector<8x16xf32>
    %c2 = arith.constant 2 : index
    %c0_50 = arith.constant 0 : index
    %c0_51 = arith.constant 0 : index
    %239 = vector.load %arg7[%c2, %c0_50, %c0_51] : memref<3x8x16xf32, #tpu.memory_space<vmem>>, vector<1x8x16xf32>
    %240 = vector.shape_cast %239 : vector<1x8x16xf32> to vector<8x16xf32>
    %241 = vector.shape_cast %238 : vector<8x16xf32> to vector<1x8x16xf32>
    tpu.vector_store %arg7[%c2, %c0_50, %c0_51], %241 {strides = array<i32>} : memref<3x8x16xf32, #tpu.memory_space<vmem>>, vector<1x8x16xf32>,
    %c0_52 = arith.constant 0 : index
    %c0_53 = arith.constant 0 : index
    %242 = vector.load %arg8[%c0_52, %c0_53] : memref<8x32xf32, #tpu.memory_space<vmem>>, vector<8x32xf32>
    tpu.vector_store %arg8[%c0_52, %c0_53], %225 {strides = array<i32>} : memref<8x32xf32, #tpu.memory_space<vmem>>, vector<8x32xf32>,
    %c0_54 = arith.constant 0 : index
    %c0_55 = arith.constant 0 : index
    %243 = vector.load %arg9[%c0_54, %c0_55] : memref<8x32xf32, #tpu.memory_space<vmem>>, vector<8x32xf32>
    tpu.vector_store %arg9[%c0_54, %c0_55], %223 {strides = array<i32>} : memref<8x32xf32, #tpu.memory_space<vmem>>, vector<8x32xf32>,
    return
  }
}

</mosaic_0001>

<bundles_post_ra>
// kernel: basic_lstm_forward.1
= control target key start
LH: loop header
LB: loop body
LE: loop exit
PB: predicated region body
PF: predicated region fallthrough
CT: control target
= control target key end

     0   :  { %v1954_v0 = vmov 0.0|0.0   ;;  %vm57_vm0 = vcmask 130048   ;;  %vm1955_vm1 = vmmov 0   ;;  %v1956_v4 = vmov 0.0   ;;  %s1957_s27 = smov 64   ;;  %s1958_s30 = smov 32   ;;  %s2286_s3 = inlined_call_operand.vmem [shape: f32[48,128], index: 3, kind: input, shape index: {}]   ;;  %s2287_s0 = inlined_call_operand.vmem [shape: f32[64,16], index: 0, kind: input, shape index: {}]   ;;  %s2288_s1 = inlined_call_operand.vmem [shape: f32[8,32], index: 1, kind: input, shape index: {}]   ;;  %s2289_s4 = inlined_call_operand.vmem [shape: f32[1,128], index: 4, kind: input, shape index: {}]   ;;  %s2290_s2 = inlined_call_operand.vmem [shape: f32[8,32], index: 2, kind: input, shape index: {}]   ;;  %s2291_s5 = inlined_call_operand.vmem [shape: f32[32,16], index: 5, kind: input, shape index: {}]   ;;  %s2292_s6 = inlined_call_operand.vmem [shape: f32[1,16], index: 6, kind: input, shape index: {}]   ;;  %s2293_s7 = inlined_call_operand.vmem [shape: f32[3,8,16], index: 7, kind: output, shape index: {0}]   ;;  %s2294_s8 = inlined_call_operand.vmem [shape: f32[8,32], index: 8, kind: output, shape index: {1}]   ;;  %s2295_s9 = inlined_call_operand.vmem [shape: f32[8,32], index: 9, kind: output, shape index: {2}]  }
   0x1   :  { %1771 = vmatprep.subr.bf16.mxu1 %v1954_v0  ;;  %v29_v1 = vld [vmem:[%s2286_s3] sm:$0xff]  ;;  %v30_v2 = vld [vmem:[%s2286_s3 + $0x8] sm:$0xff]  ;;  %v31_v3 = vld [vmem:[%s2286_s3 + $0x10] sm:$0xff]  ;;  %1624 = vmatprep.mubr.msk.f32.mxu1 %vm1955_vm1, %v1956_v4  ;;  %vm189_vm2 = vcmask 261120   ;;  %s1959_s26 = smov 48   ;;  %vm1090_vm3 = vcmask 392192  }
   0x2   :  { %v32_v5 = vld [vmem:[%s2286_s3 + $0x18] sm:$0xff]  ;;  %v33_v6 = vld [vmem:[%s2286_s3 + $0x20] sm:$0xff]  ;;  %v34_v7 = vld [vmem:[%s2286_s3 + $0x28] sm:$0xff]  ;;  %v2032_v8 = vpack.c.bf16 %v30_v2, %v29_v1 }
   0x3   :  { %v2034_v9 = vpack.c.bf16 %v32_v5, %v31_v3  ;;  %v43_v10 = vld [vmem:[%s2287_s0] sm:$0xff]  ;;  %v2041_v11 = vpack.c.bf16 %v34_v7, %v33_v6  ;;  %v44_v12 = vld [vmem:[%s2287_s0 + $0x8] sm:$0xff]  ;;  %v45_v51 = vld [vmem:[%s2287_s0 + $0x10] sm:$0xff] }
   0x4   :  { %1768 = vmatprep.subr.bf16.mxu0 %v2032_v8  ;;  %1604 = vmatprep.mubr.msk.f32.mxu0 %vm57_vm0, %v43_v10  ;;  %v187_v13 = vld [vmem:[%s2288_s1] sm:$0xff]  ;;  %v46_v52 = vld [vmem:[%s2287_s0 + $0x18] sm:$0xff]  ;;  %v48_v54 = vld [vmem:[%s2287_s0 + $0x28] sm:$0xff] }
   0x5   :  { %1773 = vmatpush3.bf16.msra.mxu1 %v2034_v9  ;;  %1770 = vmatpush3.bf16.msra.mxu0 %v2032_v8  ;;  %v2070_v14 = vld [vmem:[%s2289_s4] ss:$0 sm:$0xff]  ;;  %v49_v55 = vld [vmem:[%s2287_s0 + $0x30] sm:$0xff]  ;;  %v50_v56 = vld [vmem:[%s2287_s0 + $0x38] sm:$0xff] }
   0x6   :  { %1774 = vmatprep.subr.bf16.mxu1 %v1954_v0  ;;  %1783 = vmatprep.subr.bf16.mxu0 %v1954_v0  ;;  %v188_v22 = vld [vmem:[%s2290_s2] sm:$0xff] }
   0x7   :  { %v47_v53 = vld [vmem:[%s2287_s0 + $0x20] sm:$0xff] }
   0x8   :  { %1605 = vmatmul.mubr.msk.f32.vlgmr.msra.gmra.mrb[0].mxu0 %vm57_vm0, %v44_v12 }
   0x9   :  { %1776 = vmatpush3.bf16.msra.mxu1 %v2041_v11  ;;  %1785 = vmatpush3.bf16.msra.mxu0 %v2034_v9 }
   0xa   :  { %1777 = vmatprep.subr.bf16.mxu1 %v1954_v0  ;;  %1786 = vmatprep.subr.bf16.mxu0 %v1954_v0 }
   0xb   :  { %1607 = vmatprep.mubr.msk.f32.mxu0 %vm57_vm0, %v45_v51 }
   0xc   :  { %1625 = vmatmul.mubr.msk.f32.vlgmr.msra.gmra.mrb[0].mxu1 %vm189_vm2, %v187_v13  ;;  %1608 = vmatmul.mubr.msk.f32.gmra.mrb[2].mxu0 %vm57_vm0, %v46_v52 }
   0xd   :  { %1779 = vmatpush3.bf16.msra.mxu1 %v2034_v9  ;;  %1635 = vmatprep.mubr.msk.f32.mxu1 %vm1955_vm1, %v1956_v4 }
   0xe   :  { %1780 = vmatprep.subr.bf16.mxu1 %v1954_v0  ;;  %1788 = vmatpush3.bf16.msra.mxu0 %v2041_v11 }
   0xf   :  { %1795 = vmatprep.subr.bf16.mxu0 %v1954_v0  ;;  %1610 = vmatprep.mubr.msk.f32.mxu0 %vm57_vm0, %v47_v53 }
  0x10   :  { %1611 = vmatmul.mubr.msk.f32.gmra.mrb[4].mxu0 %vm57_vm0, %v48_v54 }
  0x11   :  { %1782 = vmatpush3.bf16.msra.mxu1 %v2041_v11  ;;  %1613 = vmatprep.mubr.msk.f32.mxu0 %vm57_vm0, %v49_v55 }
  0x12   :  { %1789 = vmatprep.subr.bf16.mxu1 %v1954_v0 }
  0x14   :  { %1614 = vmatmul.mubr.msk.f32.gmra.mrb[6].mxu0 %vm57_vm0, %v50_v56 }
  0x15   :  { %1646 = vmatprep.mubr.msk.f32.mxu0 %vm1955_vm1, %v1956_v4 }
  0xdb   :  { %v1606_v15 = vpop.f32.mrb[0].mxu0 }
  0xdc   :  { %v148_v16 = vpop.f32.mrb[1].mxu0  ;;  %v154_v37 = vadd.f32 %v1606_v15, %v2070_v14 }
  0xdd   :  { %v149_v17 = vadd.f32 %v2070_v14, %v148_v16 }
  0xdf   :  { %v259_v18 = vpop.f32.mrb[0].mxu1  ;;  %v1609_v60 = vpop.f32.mrb[2].mxu0 }
  0xe0   :  { %v263_v19 = vadd.f32 %v259_v18, %v149_v17  ;;  %v1626_v20 = vpop.f32.mrb[1].mxu1  ;;  %v158_v61 = vpop.f32.mrb[3].mxu0 }
  0xe1   :  { %v159_v5 = vadd.f32 %v2070_v14, %v158_v61 }
  0xe2   :  { %1862 = vtanh.f32 %v263_v19  ;;  %v1496_v23 = vmul.f32 -1.442695, %v263_v19 }
  0xe3   :  { %v2119_v62 = vpop.f32.mrb[4].mxu0 }
  0xe4   :  { %1864 = vpow2.f32 %v1496_v23  ;;  %v2121_v63 = vpop.f32.mrb[5].mxu0 }
  0xe7   :  { %v2123_v1 = vpop.f32.mrb[6].mxu0 }
  0xe8   :  { %v2125_v2 = vpop.f32.mrb[7].mxu0 }
  0xec   :  { %v1863_v21 = vpop.eup %1862 }
  0xed   :  { %277 = vrot.lane.b32.xlu0 %v1863_v21, %s1957_s27 }
  0xee   :  { %v1865_v24 = vpop.eup %1864 }
  0xef   :  { %v267_v25 = vadd.f32 1.0, %v1865_v24 }
  0xf1   :  { %272 = vrot.lane.b32.xlu0 %v188_v22, %s1958_s30  ;;  %1866 = vrcp.f32 %v267_v25 }
  0xfb   :  { %v1867_v26 = vpop.eup %1866 }
 0x15f   :  { %v278_v27 = vpop.permute.xlu0 %277 }
 0x160   :  { %v280_v28 = vmul.f32 %v1867_v26, %v278_v27  ;;  %v164_v27 = vadd.f32 %v1609_v60, %v2070_v14 }
 0x162   :  { %282 = vrot.lane.b32.xlu1 %v280_v28, %s1958_s30 }
 0x163   :  { %v273_v29 = vpop.permute.xlu0 %272 }
 0x164   :  { %v275_v30 = vmul.f32 %v1867_v26, %v273_v29 }
 0x1d4   :  { %v283_v31 = vpop.permute.xlu1 %282 }
 0x1d5   :  { %v285_v32 = vadd.f32 %v283_v31, %v275_v30 }
 0x1d7   :  { %1868 = vtanh.f32 %v285_v32 }
 0x1e1   :  { %v1869_v33 = vpop.eup %1868 }
 0x1e2   :  { %288 = vrot.lane.b32.xlu1 %v1869_v33, %s1957_s27 }
 0x254   :  { %v289_v34 = vpop.permute.xlu1 %288 }
 0x255   :  { %v291_v35 = vmul.f32 %v1867_v26, %v289_v34 }
 0x257   :  { %293 = vrot.lane.b32.xlu0 %v291_v35, %s1958_s30 }
 0x2c9   :  { %v294_v36 = vpop.permute.xlu0 %293 }
 0x2ca   :  { %1636 = vmatmul.mubr.msk.f32.vlgmr.msra.gmra.mrb[2].mxu1 %vm189_vm2, %v294_v36 }
 0x2cb   :  { %1791 = vmatpush3.bf16.msra.mxu1 %v2034_v9  ;;  %1657 = vmatprep.mubr.msk.f32.mxu1 %vm1955_vm1, %v1956_v4 }
 0x2cc   :  { %1792 = vmatprep.subr.bf16.mxu1 %v1954_v0 }
 0x2cf   :  { %1794 = vmatpush3.bf16.msra.mxu1 %v2041_v11 }
 0x2d0   :  { %1801 = vmatprep.subr.bf16.mxu1 %v1954_v0 }
 0x39d   :  { %v363_v38 = vpop.f32.mrb[2].mxu1 }
 0x39e   :  { %v367_v39 = vadd.f32 %v363_v38, %v154_v37  ;;  %v1637_v40 = vpop.f32.mrb[3].mxu1 }
 0x3a0   :  { %1870 = vtanh.f32 %v367_v39  ;;  %v1498_v42 = vmul.f32 -1.442695, %v367_v39 }
 0x3a2   :  { %1872 = vpow2.f32 %v1498_v42 }
 0x3aa   :  { %v1871_v41 = vpop.eup %1870 }
 0x3ab   :  { %377 = vrot.lane.b32.xlu1 %v1871_v41, %s1957_s27 }
 0x3ac   :  { %v1873_v43 = vpop.eup %1872 }
 0x3ad   :  { %v371_v44 = vadd.f32 1.0, %v1873_v43 }
 0x3af   :  { %1874 = vrcp.f32 %v371_v44 }
 0x3b9   :  { %v1875_v45 = vpop.eup %1874 }
 0x3ba   :  { %v375_v48 = vmul.f32 %v1875_v45, %v285_v32 }
 0x41d   :  { %v378_v46 = vpop.permute.xlu1 %377 }
 0x41e   :  { %v380_v47 = vmul.f32 %v1875_v45, %v378_v46 }
 0x420   :  { %382 = vrot.lane.b32.xlu0 %v380_v47, %s1958_s30 }
 0x492   :  { %v383_v49 = vpop.permute.xlu0 %382 }
 0x493   :  { %v385_v50 = vadd.f32 %v383_v49, %v375_v48 }
 0x495   :  { %1876 = vtanh.f32 %v385_v50 }
 0x49f   :  { %v1877_v57 = vpop.eup %1876 }
 0x4a0   :  { %388 = vrot.lane.b32.xlu1 %v1877_v57, %s1957_s27 }
 0x512   :  { %v389_v58 = vpop.permute.xlu1 %388 }
 0x513   :  { %v391_v59 = vmul.f32 %v1875_v45, %v389_v58  ;;  %v169_v45 = vadd.f32 %v2070_v14, %v2121_v63 }
 0x515   :  { %393 = vrot.lane.b32.xlu0 %v391_v59, %s1958_s30 }
 0x587   :  { %v394_v3 = vpop.permute.xlu0 %393 }
 0x588   :  { %1647 = vmatmul.mubr.msk.f32.vlgmr.msra.gmra.mrb[8].mxu0 %vm189_vm2, %v394_v3  ;;  %v174_v3 = vadd.f32 %v2119_v62, %v2070_v14 }
 0x589   :  { %1797 = vmatpush3.bf16.msra.mxu0 %v2034_v9  ;;  %1668 = vmatprep.mubr.msk.f32.mxu0 %vm1955_vm1, %v1956_v4 }
 0x58a   :  { %1798 = vmatprep.subr.bf16.mxu0 %v1954_v0 }
 0x58d   :  { %1800 = vmatpush3.bf16.msra.mxu0 %v2041_v11 }
 0x58e   :  { %1807 = vmatprep.subr.bf16.mxu0 %v1954_v0 }
 0x65b   :  { %v463_v6 = vpop.f32.mrb[8].mxu0 }
 0x65c   :  { %v467_v7 = vadd.f32 %v463_v6, %v159_v5  ;;  %v1648_v10 = vpop.f32.mrb[9].mxu0 }
 0x65e   :  { %1878 = vtanh.f32 %v467_v7  ;;  %v1500_v13 = vmul.f32 -1.442695, %v467_v7 }
 0x660   :  { %1880 = vpow2.f32 %v1500_v13 }
 0x668   :  { %v1879_v12 = vpop.eup %1878 }
 0x669   :  { %477 = vrot.lane.b32.xlu1 %v1879_v12, %s1957_s27 }
 0x66a   :  { %v1881_v15 = vpop.eup %1880 }
 0x66b   :  { %v471_v16 = vadd.f32 1.0, %v1881_v15 }
 0x66d   :  { %1882 = vrcp.f32 %v471_v16 }
 0x677   :  { %v1883_v17 = vpop.eup %1882 }
 0x678   :  { %v475_v20 = vmul.f32 %v1883_v17, %v385_v50 }
 0x6db   :  { %v478_v18 = vpop.permute.xlu1 %477 }
 0x6dc   :  { %v480_v19 = vmul.f32 %v1883_v17, %v478_v18 }
 0x6de   :  { %482 = vrot.lane.b32.xlu0 %v480_v19, %s1958_s30 }
 0x750   :  { %v483_v21 = vpop.permute.xlu0 %482 }
 0x751   :  { %v485_v22 = vadd.f32 %v483_v21, %v475_v20 }
 0x753   :  { %1884 = vtanh.f32 %v485_v22 }
 0x75d   :  { %v1885_v23 = vpop.eup %1884 }
 0x75e   :  { %488 = vrot.lane.b32.xlu1 %v1885_v23, %s1957_s27 }
 0x7d0   :  { %v489_v24 = vpop.permute.xlu1 %488 }
 0x7d1   :  { %v491_v25 = vmul.f32 %v1883_v17, %v489_v24 }
 0x7d3   :  { %493 = vrot.lane.b32.xlu0 %v491_v25, %s1958_s30  ;;  %v179_v25 = vadd.f32 %v2070_v14, %v2125_v2 }
 0x845   :  { %v494_v26 = vpop.permute.xlu0 %493 }
 0x846   :  { %1658 = vmatmul.mubr.msk.f32.vlgmr.msra.gmra.mrb[4].mxu1 %vm189_vm2, %v494_v26 }
 0x847   :  { %1803 = vmatpush3.bf16.msra.mxu1 %v2034_v9  ;;  %1679 = vmatprep.mubr.msk.f32.mxu1 %vm1955_vm1, %v1956_v4 }
 0x848   :  { %1804 = vmatprep.subr.bf16.mxu1 %v1954_v0 }
 0x84b   :  { %1806 = vmatpush3.bf16.msra.mxu1 %v2041_v11 }
 0x84c   :  { %1813 = vmatprep.subr.bf16.mxu1 %v1954_v0 }
 0x919   :  { %v563_v28 = vpop.f32.mrb[4].mxu1 }
 0x91a   :  { %v567_v29 = vadd.f32 %v563_v28, %v164_v27  ;;  %v1659_v30 = vpop.f32.mrb[5].mxu1 }
 0x91c   :  { %1886 = vtanh.f32 %v567_v29  ;;  %v1502_v32 = vmul.f32 -1.442695, %v567_v29 }
 0x91e   :  { %1888 = vpow2.f32 %v1502_v32 }
 0x926   :  { %v1887_v31 = vpop.eup %1886 }
 0x927   :  { %577 = vrot.lane.b32.xlu1 %v1887_v31, %s1957_s27 }
 0x928   :  { %v1889_v33 = vpop.eup %1888 }
 0x929   :  { %v571_v34 = vadd.f32 1.0, %v1889_v33 }
 0x92b   :  { %1890 = vrcp.f32 %v571_v34 }
 0x935   :  { %v1891_v35 = vpop.eup %1890 }
 0x936   :  { %v575_v38 = vmul.f32 %v1891_v35, %v485_v22 }
 0x999   :  { %v578_v36 = vpop.permute.xlu1 %577 }
 0x99a   :  { %v580_v37 = vmul.f32 %v1891_v35, %v578_v36 }
 0x99c   :  { %582 = vrot.lane.b32.xlu0 %v580_v37, %s1958_s30 }
 0xa0e   :  { %v583_v39 = vpop.permute.xlu0 %582 }
 0xa0f   :  { %v585_v40 = vadd.f32 %v583_v39, %v575_v38 }
 0xa11   :  { %1892 = vtanh.f32 %v585_v40 }
 0xa1b   :  { %v1893_v41 = vpop.eup %1892 }
 0xa1c   :  { %588 = vrot.lane.b32.xlu1 %v1893_v41, %s1957_s27 }
 0xa8e   :  { %v589_v42 = vpop.permute.xlu1 %588 }
 0xa8f   :  { %v591_v43 = vmul.f32 %v1891_v35, %v589_v42  ;;  %v184_v42 = vadd.f32 %v2123_v1, %v2070_v14 }
 0xa91   :  { %593 = vrot.lane.b32.xlu0 %v591_v43, %s1958_s30 }
 0xb03   :  { %v594_v44 = vpop.permute.xlu0 %593 }
 0xb04   :  { %1669 = vmatmul.mubr.msk.f32.vlgmr.msra.gmra.mrb[10].mxu0 %vm189_vm2, %v594_v44 }
 0xb05   :  { %1809 = vmatpush3.bf16.msra.mxu0 %v2034_v9  ;;  %1690 = vmatprep.mubr.msk.f32.mxu0 %vm1955_vm1, %v1956_v4 }
 0xb06   :  { %1810 = vmatprep.subr.bf16.mxu0 %v1954_v0 }
 0xb09   :  { %1812 = vmatpush3.bf16.msra.mxu0 %v2041_v11 }
 0xb0a   :  { %1819 = vmatprep.subr.bf16.mxu0 %v1954_v0 }
 0xbd7   :  { %v663_v46 = vpop.f32.mrb[10].mxu0 }
 0xbd8   :  { %v667_v47 = vadd.f32 %v663_v46, %v169_v45  ;;  %v1670_v48 = vpop.f32.mrb[11].mxu0 }
 0xbda   :  { %1894 = vtanh.f32 %v667_v47  ;;  %v1504_v50 = vmul.f32 -1.442695, %v667_v47 }
 0xbdc   :  { %1896 = vpow2.f32 %v1504_v50 }
 0xbe4   :  { %v1895_v49 = vpop.eup %1894 }
 0xbe5   :  { %677 = vrot.lane.b32.xlu1 %v1895_v49, %s1957_s27 }
 0xbe6   :  { %v1897_v51 = vpop.eup %1896 }
 0xbe7   :  { %v671_v52 = vadd.f32 1.0, %v1897_v51 }
 0xbe9   :  { %1898 = vrcp.f32 %v671_v52 }
 0xbf3   :  { %v1899_v53 = vpop.eup %1898 }
 0xbf4   :  { %v675_v56 = vmul.f32 %v1899_v53, %v585_v40 }
 0xc57   :  { %v678_v54 = vpop.permute.xlu1 %677 }
 0xc58   :  { %v680_v55 = vmul.f32 %v1899_v53, %v678_v54 }
 0xc5a   :  { %682 = vrot.lane.b32.xlu0 %v680_v55, %s1958_s30  ;;  %v38_v55 = vld [vmem:[%s2291_s5] sm:$0xff] }
 0xccc   :  { %v683_v57 = vpop.permute.xlu0 %682 }
 0xccd   :  { %v685_v58 = vadd.f32 %v683_v57, %v675_v56  ;;  %v39_v56 = vld [vmem:[%s2291_s5 + $0x8] sm:$0xff]  ;;  %v40_v57 = vld [vmem:[%s2291_s5 + $0x10] sm:$0xff] }
 0xccf   :  { %1900 = vtanh.f32 %v685_v58 }
 0xcd9   :  { %v1901_v59 = vpop.eup %1900 }
 0xcda   :  { %688 = vrot.lane.b32.xlu1 %v1901_v59, %s1957_s27  ;;  %v41_v59 = vld [vmem:[%s2291_s5 + $0x18] sm:$0xff] }
 0xd4c   :  { %v689_v60 = vpop.permute.xlu1 %688 }
 0xd4d   :  { %v691_v61 = vmul.f32 %v1899_v53, %v689_v60  ;;  %v1823_v60 = vpack.c.bf16 %v41_v59, %v40_v57 }
 0xd4f   :  { %693 = vrot.lane.b32.xlu0 %v691_v61, %s1958_s30 }
 0xdc1   :  { %v694_v63 = vpop.permute.xlu0 %693 }
 0xdc2   :  { %1680 = vmatmul.mubr.msk.f32.vlgmr.msra.gmra.mrb[6].mxu1 %vm189_vm2, %v694_v63 }
 0xdc3   :  { %1815 = vmatpush3.bf16.msra.mxu1 %v2034_v9  ;;  %1701 = vmatprep.mubr.msk.f32.mxu1 %vm1955_vm1, %v1956_v4 }
 0xdc4   :  { %1816 = vmatprep.subr.bf16.mxu1 %v1954_v0 }
 0xdc7   :  { %1818 = vmatpush3.bf16.msra.mxu1 %v2041_v11 }
 0xdc8   :  { %1825 = vmatprep.subr.bf16.mxu1 %v1954_v0 }
 0xe95   :  { %v763_v5 = vpop.f32.mrb[6].mxu1 }
 0xe96   :  { %v767_v6 = vadd.f32 %v763_v5, %v174_v3  ;;  %v1681_v7 = vpop.f32.mrb[7].mxu1 }
 0xe98   :  { %1902 = vtanh.f32 %v767_v6  ;;  %v1506_v12 = vmul.f32 -1.442695, %v767_v6  ;;  %v2226_v6 = vld [vmem:[%s2292_s6] ss:$0 sm:$0xff] }
 0xe9a   :  { %1904 = vpow2.f32 %v1506_v12 }
 0xea2   :  { %v1903_v10 = vpop.eup %1902 }
 0xea3   :  { %777 = vrot.lane.b32.xlu1 %v1903_v10, %s1957_s27 }
 0xea4   :  { %v1905_v13 = vpop.eup %1904 }
 0xea5   :  { %v771_v15 = vadd.f32 1.0, %v1905_v13 }
 0xea7   :  { %1906 = vrcp.f32 %v771_v15 }
 0xeb1   :  { %v1907_v16 = vpop.eup %1906 }
 0xeb2   :  { %v775_v19 = vmul.f32 %v1907_v16, %v685_v58  ;;  %v1820_v58 = vpack.c.bf16 %v39_v56, %v38_v55 }
 0xf15   :  { %v778_v17 = vpop.permute.xlu1 %777 }
 0xf16   :  { %v780_v18 = vmul.f32 %v1907_v16, %v778_v17 }
 0xf18   :  { %782 = vrot.lane.b32.xlu0 %v780_v18, %s1958_s30 }
 0xf8a   :  { %v783_v20 = vpop.permute.xlu0 %782 }
 0xf8b   :  { %v785_v62 = vadd.f32 %v783_v20, %v775_v19 }
 0xf8d   :  { %1908 = vtanh.f32 %v785_v62 }
 0xf97   :  { %v1909_v21 = vpop.eup %1908 }
 0xf98   :  { %788 = vrot.lane.b32.xlu1 %v1909_v21, %s1957_s27 }
0x100a   :  { %v789_v22 = vpop.permute.xlu1 %788 }
0x100b   :  { %v791_v23 = vmul.f32 %v1907_v16, %v789_v22 }
0x100d   :  { %793 = vrot.lane.b32.xlu0 %v791_v23, %s1958_s30 }
0x107f   :  { %v794_v24 = vpop.permute.xlu0 %793 }
0x1080   :  { %1691 = vmatmul.mubr.msk.f32.vlgmr.msra.gmra.mrb[12].mxu0 %vm189_vm2, %v794_v24 }
0x1081   :  { %1712 = vmatprep.mubr.msk.f32.mxu0 %vm1955_vm1, %v1956_v4  ;;  %1821 = vmatpush3.bf16.msra.mxu0 %v1820_v58 }
0x1082   :  { %1822 = vmatprep.subr.bf16.mxu0 %v1954_v0 }
0x1085   :  { %1824 = vmatpush3.bf16.msra.mxu0 %v1823_v60 }
0x1086   :  { %1834 = vmatprep.subr.bf16.mxu0 %v1954_v0 }
0x1153   :  { %v863_v26 = vpop.f32.mrb[12].mxu0 }
0x1154   :  { %v867_v27 = vadd.f32 %v863_v26, %v179_v25  ;;  %v1692_v28 = vpop.f32.mrb[13].mxu0 }
0x1156   :  { %1910 = vtanh.f32 %v867_v27  ;;  %v1508_v30 = vmul.f32 -1.442695, %v867_v27 }
0x1158   :  { %1912 = vpow2.f32 %v1508_v30 }
0x1160   :  { %v1911_v29 = vpop.eup %1910 }
0x1161   :  { %877 = vrot.lane.b32.xlu1 %v1911_v29, %s1957_s27 }
0x1162   :  { %v1913_v31 = vpop.eup %1912 }
0x1163   :  { %v871_v32 = vadd.f32 1.0, %v1913_v31 }
0x1165   :  { %1914 = vrcp.f32 %v871_v32 }
0x116f   :  { %v1915_v33 = vpop.eup %1914 }
0x1170   :  { %v875_v36 = vmul.f32 %v1915_v33, %v785_v62 }
0x11d3   :  { %v878_v34 = vpop.permute.xlu1 %877 }
0x11d4   :  { %v880_v35 = vmul.f32 %v1915_v33, %v878_v34 }
0x11d6   :  { %882 = vrot.lane.b32.xlu0 %v880_v35, %s1958_s30 }
0x1248   :  { %v883_v37 = vpop.permute.xlu0 %882 }
0x1249   :  { %v885_v2 = vadd.f32 %v883_v37, %v875_v36 }
0x124b   :  { %1916 = vtanh.f32 %v885_v2 }
0x1255   :  { %v1917_v38 = vpop.eup %1916 }
0x1256   :  { %888 = vrot.lane.b32.xlu1 %v1917_v38, %s1957_s27 }
0x12c8   :  { %v889_v39 = vpop.permute.xlu1 %888 }
0x12c9   :  { %v891_v40 = vmul.f32 %v1915_v33, %v889_v39 }
0x12cb   :  { %893 = vrot.lane.b32.xlu0 %v891_v40, %s1958_s30 }
0x133d   :  { %v894_v41 = vpop.permute.xlu0 %893 }
0x133e   :  { %1702 = vmatmul.mubr.msk.f32.vlgmr.msra.gmra.mrb[8].mxu1 %vm189_vm2, %v894_v41 }
0x133f   :  { %1827 = vmatpush3.bf16.msra.mxu1 %v2032_v8  ;;  %1727 = vmatprep.mubr.msk.f32.mxu1 %vm1955_vm1, %v1956_v4 }
0x1340   :  { %1828 = vmatprep.subr.bf16.mxu1 %v1954_v0 }
0x1343   :  { %1830 = vmatpush3.bf16.msra.mxu1 %v2034_v9 }
0x1344   :  { %1831 = vmatprep.subr.bf16.mxu1 %v1954_v0 }
0x1347   :  { %1833 = vmatpush3.bf16.msra.mxu1 %v2041_v11 }
0x1348   :  { %1849 = vmatprep.subr.bf16.mxu1 %v1954_v0 }
0x1411   :  { %v963_v43 = vpop.f32.mrb[8].mxu1 }
0x1412   :  { %v967_v44 = vadd.f32 %v963_v43, %v184_v42  ;;  %v1703_v45 = vpop.f32.mrb[9].mxu1 }
0x1414   :  { %1918 = vtanh.f32 %v967_v44  ;;  %v1510_v47 = vmul.f32 -1.442695, %v967_v44 }
0x1416   :  { %1920 = vpow2.f32 %v1510_v47 }
0x141e   :  { %v1919_v46 = vpop.eup %1918 }
0x141f   :  { %977 = vrot.lane.b32.xlu1 %v1919_v46, %s1957_s27 }
0x1420   :  { %v1921_v48 = vpop.eup %1920 }
0x1421   :  { %v971_v49 = vadd.f32 1.0, %v1921_v48 }
0x1423   :  { %1922 = vrcp.f32 %v971_v49 }
0x142d   :  { %v1923_v50 = vpop.eup %1922 }
0x142e   :  { %v975_v53 = vmul.f32 %v1923_v50, %v885_v2 }
0x1491   :  { %v978_v51 = vpop.permute.xlu1 %977 }
0x1492   :  { %v980_v52 = vmul.f32 %v1923_v50, %v978_v51 }
0x1494   :  { %982 = vrot.lane.b32.xlu0 %v980_v52, %s1958_s30 }
0x1506   :  { %v983_v54 = vpop.permute.xlu0 %982 }
0x1507   :  { %v2199_v1 = vadd.f32 %v983_v54, %v975_v53 }
0x1509   :  { %1924 = vtanh.f32 %v2199_v1 }
0x1513   :  { %v1925_v61 = vpop.eup %1924 }
0x1514   :  { %988 = vrot.lane.b32.xlu1 %v1925_v61, %s1957_s27 }
0x1586   :  { %v989_v63 = vpop.permute.xlu1 %988 }
0x1587   :  { %v991_v3 = vmul.f32 %v1923_v50, %v989_v63 }
0x1589   :  { %999 = vrot.lane.b32.xlu0 %v991_v3, %s1958_s30 }
0x15fb   :  { %v1000_v5 = vpop.permute.xlu0 %999 }
0x15fc   :  { %1713 = vmatmul.mubr.msk.f32.vlgmr.msra.gmra.mrb[14].mxu0 %vm189_vm2, %v1000_v5 }
0x15fd   :  { %1836 = vmatpush3.bf16.msra.mxu0 %v1820_v58  ;;  %1738 = vmatprep.mubr.msk.f32.mxu0 %vm1955_vm1, %v1956_v4 }
0x15fe   :  { %1837 = vmatprep.subr.bf16.mxu0 %v1954_v0 }
0x1601   :  { %1839 = vmatpush3.bf16.msra.mxu0 %v1823_v60 }
0x1602   :  { %1840 = vmatprep.subr.bf16.mxu0 %v1954_v0 }
0x16cf   :  { %v1069_v7 = vpop.f32.mrb[14].mxu0 }
0x16d0   :  { %v1070_v10 = vadd.f32 %v2226_v6, %v1069_v7  ;;  %v1714_v12 = vpop.f32.mrb[15].mxu0 }
0x16d2   :  { %v1073_v13 = vsel %vm57_vm0, %v1070_v10, -inf }
0x16d3   :  { %1074 = vmax.xlane.f32.xlu1 %v1073_v13 }
0x1760   :  { %v1075_v15 = vpop.xlane.xlu1 %1074 }
0x1761   :  { %v1076_v16 = vsub.f32 %v1070_v10, %v1075_v15 }
0x1763   :  { %v1077_v17 = vmul.f32 1.442695, %v1076_v16 }
0x1765   :  { %1926 = vpow2.f32 %v1077_v17 }
0x176f   :  { %v1927_v18 = vpop.eup %1926 }
0x1770   :  { %v1079_v19 = vsel %vm57_vm0, %v1927_v18, 0.0 }
0x1771   :  { %1080 = vadd.xlane.f32.xlu0 %v1079_v19 }
0x1787   :  { %1086 = vrot.lane.b32.xlu0 %v991_v3, %s1959_s26 }
0x17fe   :  { %v1081_v20 = vpop.xlane.xlu0 %1080 }
0x17ff   :  { %1928 = vlog2.f32 %v1081_v20 }
0x1802   :  { %v1087_v23 = vpop.permute.xlu0 %1086 }
0x1809   :  { %v1929_v62 = vpop.eup %1928 }
0x180a   :  { %v1083_v21 = vmul.f32 0.6931472, %v1929_v62 }
0x180c   :  { %v1084_v22 = vsub.f32 %v1076_v16, %v1083_v21 }
0x180e   :  { %1085 = vst.msk [vmem:[%s2293_s7] sm:$0xff] %vm57_vm0, %v1084_v22  ;;  %v1089_v24 = vsel %vm57_vm0, %v1084_v22, %v1087_v23 }
0x180f   :  { %1728 = vmatmul.mubr.msk.f32.vlgmr.msra.gmra.mrb[10].mxu1 %vm1090_vm3, %v1089_v24 }
0x1810   :  { %1851 = vmatpush3.bf16.msra.mxu1 %v1820_v58  ;;  %1764 = vmatprep.mubr.msk.f32.mxu1 %vm1955_vm1, %v1956_v4 }
0x1811   :  { %1852 = vmatprep.subr.bf16.mxu1 %v1954_v0 }
0x1814   :  { %1854 = vmatpush3.bf16.msra.mxu1 %v1823_v60 }
0x18e2   :  { %v1160_v25 = vpop.f32.mrb[10].mxu1 }
0x18e3   :  { %v1161_v26 = vadd.f32 %v2070_v14, %v1160_v25  ;;  %v1729_v27 = vpop.f32.mrb[11].mxu1 }
0x18e5   :  { %1930 = vtanh.f32 %v1161_v26  ;;  %v1514_v29 = vmul.f32 -1.442695, %v1161_v26 }
0x18e7   :  { %1932 = vpow2.f32 %v1514_v29 }
0x18ef   :  { %v1931_v28 = vpop.eup %1930 }
0x18f0   :  { %1173 = vrot.lane.b32.xlu1 %v1931_v28, %s1957_s27 }
0x18f1   :  { %v1933_v30 = vpop.eup %1932 }
0x18f2   :  { %v1167_v31 = vadd.f32 1.0, %v1933_v30 }
0x18f4   :  { %1934 = vrcp.f32 %v1167_v31 }
0x18fe   :  { %v1935_v32 = vpop.eup %1934 }
0x18ff   :  { %v1171_v35 = vmul.f32 %v1935_v32, %v2199_v1 }
0x1962   :  { %v1174_v33 = vpop.permute.xlu1 %1173 }
0x1963   :  { %v1176_v34 = vmul.f32 %v1935_v32, %v1174_v33 }
0x1965   :  { %1178 = vrot.lane.b32.xlu1 %v1176_v34, %s1958_s30 }
0x19d7   :  { %v1179_v36 = vpop.permute.xlu1 %1178 }
0x19d8   :  { %v1181_v37 = vadd.f32 %v1179_v36, %v1171_v35 }
0x19da   :  { %1936 = vtanh.f32 %v1181_v37 }
0x19e4   :  { %v1937_v2 = vpop.eup %1936 }
0x19e5   :  { %1184 = vrot.lane.b32.xlu0 %v1937_v2, %s1957_s27 }
0x1a57   :  { %v1185_v38 = vpop.permute.xlu0 %1184 }
0x1a58   :  { %v1187_v39 = vmul.f32 %v1935_v32, %v1185_v38 }
0x1a5a   :  { %1189 = vrot.lane.b32.xlu1 %v1187_v39, %s1958_s30 }
0x1acc   :  { %v1190_v40 = vpop.permute.xlu1 %1189 }
0x1acd   :  { %1739 = vmatmul.mubr.msk.f32.vlgmr.msra.gmra.mrb[16].mxu0 %vm189_vm2, %v1190_v40 }
0x1ace   :  { %1842 = vmatpush3.bf16.msra.mxu0 %v2032_v8  ;;  %1753 = vmatprep.mubr.msk.f32.mxu0 %vm1955_vm1, %v1956_v4 }
0x1acf   :  { %1843 = vmatprep.subr.bf16.mxu0 %v1954_v0 }
0x1ad2   :  { %1845 = vmatpush3.bf16.msra.mxu0 %v2034_v9 }
0x1ad3   :  { %1846 = vmatprep.subr.bf16.mxu0 %v1954_v0 }
0x1ad6   :  { %1848 = vmatpush3.bf16.msra.mxu0 %v2041_v11 }
0x1ba0   :  { %v1259_v41 = vpop.f32.mrb[16].mxu0 }
0x1ba1   :  { %v1260_v42 = vadd.f32 %v2226_v6, %v1259_v41  ;;  %v1740_v43 = vpop.f32.mrb[17].mxu0 }
0x1ba3   :  { %v1263_v44 = vsel %vm57_vm0, %v1260_v42, -inf }
0x1ba4   :  { %1264 = vmax.xlane.f32.xlu0 %v1263_v44 }
0x1bba   :  { %1277 = vrot.lane.b32.xlu0 %v1187_v39, %s1959_s26 }
0x1c31   :  { %v1265_v8 = vpop.xlane.xlu0 %1264 }
0x1c32   :  { %v1266_v45 = vsub.f32 %v1260_v42, %v1265_v8 }
0x1c34   :  { %v1267_v4 = vmul.f32 1.442695, %v1266_v45 }
0x1c35   :  { %v1278_v49 = vpop.permute.xlu0 %1277 }
0x1c36   :  { %1938 = vpow2.f32 %v1267_v4 }
0x1c40   :  { %v1939_v46 = vpop.eup %1938 }
0x1c41   :  { %v1269_v9 = vsel %vm57_vm0, %v1939_v46, 0.0 }
0x1c42   :  { %1270 = vadd.xlane.f32.xlu1 %v1269_v9 }
0x1ccf   :  { %v1271_v0 = vpop.xlane.xlu1 %1270 }
0x1cd0   :  { %1940 = vlog2.f32 %v1271_v0 }
0x1cda   :  { %v1941_v11 = vpop.eup %1940 }
0x1cdb   :  { %v1273_v47 = vmul.f32 0.6931472, %v1941_v11 }
0x1cdd   :  { %v1274_v48 = vsub.f32 %v1266_v45, %v1273_v47 }
0x1cdf   :  { %1516 = vst.msk [vmem:[%s2293_s7 + $0x8] sm:$0xff] %vm57_vm0, %v1274_v48  ;;  %v1280_v50 = vsel %vm57_vm0, %v1274_v48, %v1278_v49 }
0x1ce0   :  { %1754 = vmatmul.mubr.msk.f32.vlgmr.msra.gmra.mrb[18].mxu0 %vm1090_vm3, %v1280_v50 }
0x1db3   :  { %v1350_v51 = vpop.f32.mrb[18].mxu0 }
0x1db4   :  { %v1351_v52 = vadd.f32 %v2070_v14, %v1350_v51  ;;  %v1755_v53 = vpop.f32.mrb[19].mxu0 }
0x1db6   :  { %1942 = vtanh.f32 %v1351_v52  ;;  %v1518_v1 = vmul.f32 -1.442695, %v1351_v52 }
0x1db8   :  { %1944 = vpow2.f32 %v1518_v1 }
0x1dc0   :  { %v1943_v54 = vpop.eup %1942 }
0x1dc1   :  { %1363 = vrot.lane.b32.xlu1 %v1943_v54, %s1957_s27 }
0x1dc2   :  { %v1945_v55 = vpop.eup %1944 }
0x1dc3   :  { %v1357_v56 = vadd.f32 1.0, %v1945_v55 }
0x1dc5   :  { %1946 = vrcp.f32 %v1357_v56 }
0x1dcf   :  { %v1947_v57 = vpop.eup %1946 }
0x1dd0   :  { %v1361_v60 = vmul.f32 %v1947_v57, %v1181_v37 }
0x1e33   :  { %v1364_v58 = vpop.permute.xlu1 %1363 }
0x1e34   :  { %v1366_v59 = vmul.f32 %v1947_v57, %v1364_v58 }
0x1e36   :  { %1368 = vrot.lane.b32.xlu0 %v1366_v59, %s1958_s30 }
0x1ea8   :  { %v1369_v61 = vpop.permute.xlu0 %1368 }
0x1ea9   :  { %v1371_v63 = vadd.f32 %v1369_v61, %v1361_v60 }
0x1eab   :  { %1948 = vtanh.f32 %v1371_v63 }
0x1eb5   :  { %v1949_v14 = vpop.eup %1948 }
0x1eb6   :  { %1374 = vrot.lane.b32.xlu1 %v1949_v14, %s1957_s27  ;;  %s1960_s27 = smov 96  }
0x1f28   :  { %v1375_v3 = vpop.permute.xlu1 %1374 }
0x1f29   :  { %v1377_v5 = vmul.f32 %v1947_v57, %v1375_v3 }
0x1f2b   :  { %1379 = vrot.lane.b32.xlu0 %v1377_v5, %s1958_s30 }
0x1f9d   :  { %v1380_v7 = vpop.permute.xlu0 %1379 }
0x1f9e   :  { %1468 = vst.msk [vmem:[%s2294_s8] sm:$0xff] %vm189_vm2, %v1380_v7  ;;  %1765 = vmatmul.mubr.msk.f32.vlgmr.msra.gmra.mrb[12].mxu1 %vm189_vm2, %v1380_v7 }
0x2071   :  { %v1449_v10 = vpop.f32.mrb[12].mxu1 }
0x2072   :  { %v1450_v12 = vadd.f32 %v2226_v6, %v1449_v10  ;;  %v1766_v13 = vpop.f32.mrb[13].mxu1 }
0x2074   :  { %v1453_v15 = vsel %vm57_vm0, %v1450_v12, -inf }
0x2075   :  { %1454 = vmax.xlane.f32.xlu1 %v1453_v15 }
0x2102   :  { %v1455_v16 = vpop.xlane.xlu1 %1454 }
0x2103   :  { %v1456_v17 = vsub.f32 %v1450_v12, %v1455_v16 }
0x2105   :  { %v1457_v18 = vmul.f32 1.442695, %v1456_v17 }
0x2107   :  { %1950 = vpow2.f32 %v1457_v18 }
0x2111   :  { %v1951_v19 = vpop.eup %1950 }
0x2112   :  { %v1459_v20 = vsel %vm57_vm0, %v1951_v19, 0.0 }
0x2113   :  { %1460 = vadd.xlane.f32.xlu0 %v1459_v20 }
0x2129   :  { %1470 = vrot.lane.b32.xlu0 %v1371_v63, %s1960_s27 }
0x21a0   :  { %v1461_v62 = vpop.xlane.xlu0 %1460 }
0x21a1   :  { %1952 = vlog2.f32 %v1461_v62 }
0x21a4   :  { %v1471_v21 = vpop.permute.xlu0 %1470 }
0x21a5   :  { %1473 = vst.msk [vmem:[%s2295_s9] sm:$0xff] %vm189_vm2, %v1471_v21 }
0x21ab   :  { %v1953_v6 = vpop.eup %1952 }
0x21ac   :  { %v1463_v22 = vmul.f32 0.6931472, %v1953_v6 }
0x21ae   :  { %v1464_v23 = vsub.f32 %v1456_v17, %v1463_v22 }
0x21b0   :  { %1520 = vst.msk [vmem:[%s2293_s7 + $0x10] sm:$0xff] %vm57_vm0, %v1464_v23 }

</bundles_post_ra>
